<compile_context>
chip_gen: v5e
topology: v5e:2x2
jax: 0.10.0
libtpu: 0.0.40
codegen_flags: <defaults>
</compile_context>

<pallas_src>
import functools

import jax
import jax.numpy as jnp
from jax.experimental import pallas as pl
from jax.experimental.pallas import tpu as pltpu


# ----------------------------------------------------------------------------- kernels


def _linear_kernel(x_ref, w_ref, b_ref, o_ref):
    y = jnp.dot(x_ref[...], w_ref[...], preferred_element_type=jnp.float32) + b_ref[...]
    o_ref[...] = y.astype(o_ref.dtype)


def _moe_shared_block_kernel(x_ref, wr_ref, w1_ref, w2_ref, ws1_ref, bs1_ref,
                             ws2_ref, bs2_ref, o_ref, *, num_experts, d_hidden, top_k):
    neg_inf = jnp.float32(-1e30)

    x = x_ref[...]                                   # (TN, D) f32
    x_bf = x.astype(jnp.bfloat16)

    # ---------------- router: logits -> top-k -> softmax gates (dense (TN, E), f32)
    logits = jnp.dot(x, wr_ref[...], preferred_element_type=jnp.float32)   # (TN, E)
    lane = jax.lax.broadcasted_iota(jnp.int32, logits.shape, 1)

    selected = jnp.zeros_like(logits)                # f32 {0,1} mask of top-k entries
    run = logits
    for _ in range(top_k):                           # k iterations of "extract max"
        m = jnp.max(run, axis=-1, keepdims=True)
        hit = run == m
        # first occurrence of the max (deterministic tie-break, like torch.topk)
        first = jnp.min(jnp.where(hit, lane, num_experts), axis=-1, keepdims=True)
        sel = (lane == first).astype(jnp.float32)
        selected = jnp.maximum(selected, sel)
        run = jnp.where(sel > 0, neg_inf, run)

    mmax = jnp.max(jnp.where(selected > 0, logits, neg_inf), axis=-1, keepdims=True)
    p = selected * jnp.exp(logits - mmax)            # exp(logits - global max) <= 1
    gate = p / jnp.sum(p, axis=-1, keepdims=True)    # (TN, E), zero off top-k

    # ---------------- experts, stage 1 fused across experts: (TN, D) @ (D, E*H)
    h_all = jnp.dot(x_bf, w1_ref[...], preferred_element_type=jnp.float32)  # (TN, E*H)
    h_all = jnp.maximum(h_all, 0.0)
    h_all_bf = h_all.astype(jnp.bfloat16)

    # ---------------- shared expert: Linear-ReLU-Linear-ReLU (f32 elementwise math)
    s = jnp.dot(x_bf, ws1_ref[...], preferred_element_type=jnp.float32) + bs1_ref[...]
    s = jnp.maximum(s, 0.0)
    s = jnp.dot(s.astype(jnp.bfloat16), ws2_ref[...],
                preferred_element_type=jnp.float32) + bs2_ref[...]
    s = jnp.maximum(s, 0.0)                          # (TN, D)

    # ---------------- experts, stage 2 + gated accumulate (static unrolled loop)
    acc = s
    for e in range(num_experts):
        h_e = h_all_bf[:, e * d_hidden:(e + 1) * d_hidden]               # (TN, H)
        y_e = jnp.dot(h_e, w2_ref[e], preferred_element_type=jnp.float32)  # (TN, D)
        y_e = jnp.maximum(y_e, 0.0)
        acc = acc + gate[:, e:e + 1] * y_e

    o_ref[...] = acc.astype(o_ref.dtype)


# ----------------------------------------------------------------------------- wrappers

_VMEM_LIMIT = 32 * 1024 * 1024


def _check_tile(n, tn):
    assert n % tn == 0, (n, tn)
    assert tn == n or tn % 8 == 0, tn


def linear(x, w, b, *, token_tile=None):
    """y = x @ w + b  (f32), token-tiled over rows."""
    n, d_in = x.shape
    d_out = w.shape[1]
    tn = n if token_tile is None else min(token_tile, n)
    _check_tile(n, tn)
    grid = (n // tn,)
    return pl.pallas_call(
        _linear_kernel,
        out_shape=jax.ShapeDtypeStruct((n, d_out), jnp.float32),
        grid=grid,
        in_specs=[
            pl.BlockSpec((tn, d_in), lambda i: (i, 0)),
            pl.BlockSpec((d_in, d_out), lambda i: (0, 0)),
            pl.BlockSpec((1, d_out), lambda i: (0, 0)),
        ],
        out_specs=pl.BlockSpec((tn, d_out), lambda i: (i, 0)),
        compiler_params=pltpu.CompilerParams(
            dimension_semantics=("parallel",),
            vmem_limit_bytes=_VMEM_LIMIT,
        ),
        cost_estimate=pl.CostEstimate(
            flops=int(2 * n * d_in * d_out),
            transcendentals=0,
            bytes_accessed=int(4 * (x.size + w.size + b.size + n * d_out)),
        ),
    )(x, w, b)


def moe_shared_block(x, router_w, w1, w2, ws1, bs1, ws2, bs2, *, top_k, token_tile=None):
    """One MoE block: top-k routed experts + shared expert, eval mode.

    x        : (N, D)      f32
    router_w : (D, E)      f32
    w1       : (E, D, H)   bf16   (expert stage-1, no bias)
    w2       : (E, H, D)   bf16   (expert stage-2, no bias)
    ws1, ws2 : (D, D)      bf16   (shared expert)
    bs1, bs2 : (1, D)      f32
    returns  : (N, D)      f32
    """
    n, d = x.shape
    e, _, h = w1.shape
    tn = n if token_tile is None else min(token_tile, n)
    _check_tile(n, tn)
    grid = (n // tn,)

    # Stage-1 weights fused across experts (wrapper-side layout): (E, D, H) -> (D, E*H)
    w1_all = jnp.transpose(w1, (1, 0, 2)).reshape(d, e * h)

    flops = 2 * n * d * e + 2 * n * d * e * h + 2 * n * e * h * d + 4 * n * d * d
    w_bytes = sum(int(a.size) * a.dtype.itemsize
                  for a in (router_w, w1_all, w2, ws1, bs1, ws2, bs2))
    bytes_accessed = 8 * n * d + grid[0] * w_bytes

    kernel = functools.partial(_moe_shared_block_kernel,
                               num_experts=e, d_hidden=h, top_k=top_k)
    return pl.pallas_call(
        kernel,
        out_shape=jax.ShapeDtypeStruct((n, d), jnp.float32),
        grid=grid,
        in_specs=[
            pl.BlockSpec((tn, d), lambda i: (i, 0)),          # x tile
            pl.BlockSpec((d, e), lambda i: (0, 0)),           # router_w (resident)
            pl.BlockSpec((d, e * h), lambda i: (0, 0)),       # w1 fused (resident)
            pl.BlockSpec((e, h, d), lambda i: (0, 0, 0)),     # w2 (resident)
            pl.BlockSpec((d, d), lambda i: (0, 0)),           # shared ws1
            pl.BlockSpec((1, d), lambda i: (0, 0)),           # shared bs1
            pl.BlockSpec((d, d), lambda i: (0, 0)),           # shared ws2
            pl.BlockSpec((1, d), lambda i: (0, 0)),           # shared bs2
        ],
        out_specs=pl.BlockSpec((tn, d), lambda i: (i, 0)),
        compiler_params=pltpu.CompilerParams(
            dimension_semantics=("parallel",),                # megacore over token tiles
            vmem_limit_bytes=_VMEM_LIMIT,
        ),
        cost_estimate=pl.CostEstimate(
            flops=int(flops),
            transcendentals=int(n * e),
            bytes_accessed=int(bytes_accessed),
        ),
    )(x, router_w, w1_all, w2, ws1, bs1, ws2, bs2)


def moe_sparse_shared_forward(x, params, *, top_k, token_tile=None):
    """Eval-mode forward of MoESparseShared. x: (B, d_in) f32 -> (B, d_out) f32."""
    h = linear(x, params["embed_w"], params["embed_b"], token_tile=token_tile)
    for blk in params["blocks"]:
        h = moe_shared_block(h, blk["router_w"], blk["w1"], blk["w2"],
                             blk["ws1"], blk["bs1"], blk["ws2"], blk["bs2"],
                             top_k=top_k, token_tile=token_tile)
    if params["out_w"] is not None:
        h = linear(h, params["out_w"], params["out_b"], token_tile=token_tile)
    return h


# ----------------------------------------------------------------------------- params / reference


def init_params(key, *, d_in, d_block, d_out, n_blocks, num_experts, moe_ratio):
    """Matches init_rsqrt_uniform_ semantics: U(-1/sqrt(d), 1/sqrt(d))."""
    d_hidden = int(d_block * moe_ratio)

    def u(kk, shape, d):
        bound = d ** (-0.5)
        return jax.random.uniform(kk, shape, jnp.float32, -bound, bound)

    keys = jax.random.split(key, 2 + n_blocks)
    ke1, ke2 = jax.random.split(keys[0])
    params = {
        "embed_w": u(ke1, (d_in, d_block), d_in),
        "embed_b": u(ke2, (1, d_block), d_in),
    }
    blocks = []
    for i in range(n_blocks):
        kb = jax.random.split(keys[2 + i], 5)
        blocks.append({
            "router_w": u(kb[0], (d_block, num_experts), d_block),          # f32
            "w1": u(kb[1], (num_experts, d_block, d_hidden), d_hidden).astype(jnp.bfloat16),
            "w2": u(kb[2], (num_experts, d_hidden, d_block), d_block).astype(jnp.bfloat16),
            "ws1": u(kb[3], (d_block, d_block), d_block).astype(jnp.bfloat16),
            "bs1": jnp.zeros((1, d_block), jnp.float32),   # shared-expert biases zero-init
            "ws2": u(kb[4], (d_block, d_block), d_block).astype(jnp.bfloat16),
            "bs2": jnp.zeros((1, d_block), jnp.float32),
        })
    params["blocks"] = blocks
    if d_out is not None:
        ko1, ko2 = jax.random.split(keys[1])
        params["out_w"] = u(ko1, (d_block, d_out), d_block)
        params["out_b"] = u(ko2, (1, d_out), d_block)
    else:
        params["out_w"] = None
        params["out_b"] = None
    return params


def reference_forward(x, params, *, top_k):
    """Plain-JAX reference mirroring the PyTorch module (same bf16/f32 mix as kernel)."""
    def mm(a, b):  # bf16 operands, f32 accumulation (same as kernel dots)
        return jnp.dot(a.astype(jnp.bfloat16), b.astype(jnp.bfloat16),
                       preferred_element_type=jnp.float32)

    h = jnp.dot(x, params["embed_w"], preferred_element_type=jnp.float32) + params["embed_b"]
    for blk in params["blocks"]:
        # router
        logits = jnp.dot(h, blk["router_w"], preferred_element_type=jnp.float32)
        top_v, top_i = jax.lax.top_k(logits, top_k)
        top_w = jax.nn.softmax(top_v, axis=-1)
        # dense expert compute (as the torch einsum does), then sparse gather/combine
        e1 = jnp.einsum("nd,edh->enh", h.astype(jnp.bfloat16), blk["w1"],
                        preferred_element_type=jnp.float32)
        e1 = jnp.maximum(e1, 0.0)
        e2 = jnp.einsum("enh,ehd->end", e1.astype(jnp.bfloat16), blk["w2"],
                        preferred_element_type=jnp.float32)
        e2 = jnp.maximum(e2, 0.0)
        e2 = jnp.transpose(e2, (1, 0, 2))                                  # (n, E, d)
        idx = jnp.broadcast_to(top_i[:, :, None],
                               (top_i.shape[0], top_i.shape[1], e2.shape[-1]))
        topk_x = jnp.take_along_axis(e2, idx, axis=1)                      # (n, k, d)
        moe = jnp.einsum("nkd,nk->nd", topk_x, top_w)
        # shared expert
        s = jnp.maximum(mm(h, blk["ws1"]) + blk["bs1"], 0.0)
        s = jnp.maximum(mm(s, blk["ws2"]) + blk["bs2"], 0.0)
        h = moe + s
    if params["out_w"] is not None:
        h = jnp.dot(h, params["out_w"], preferred_element_type=jnp.float32) + params["out_b"]
    return h


# ----------------------------------------------------------------------------- demo


if __name__ == "__main__":
    B, D_IN, D_BLOCK, D_OUT = 32, 24, 32, 16
    N_BLOCKS, NUM_EXPERTS, K, MOE_RATIO = 2, 32, 4, 0.25
    TOKEN_TILE = 16    # 2 token tiles -> exercises the "parallel" grid axis

    key = jax.random.PRNGKey(0)
    kx, kp = jax.random.split(key)
    x = jax.random.normal(kx, (B, D_IN), dtype=jnp.float32)
    params = init_params(kp, d_in=D_IN, d_block=D_BLOCK, d_out=D_OUT,
                         n_blocks=N_BLOCKS, num_experts=NUM_EXPERTS,
                         moe_ratio=MOE_RATIO)

    out = moe_sparse_shared_forward(x, params, top_k=K, token_tile=TOKEN_TILE)
    out = jax.block_until_ready(out)
    assert out.shape == (B, D_OUT), out.shape

    ref = jax.block_until_ready(reference_forward(x, params, top_k=K))
    max_err = float(jnp.max(jnp.abs(out - ref)))
    assert jnp.allclose(out, ref, atol=1e-2, rtol=1e-2), f"mismatch vs reference (max |err| = {max_err})"

    print("KERNEL_OK")
</pallas_src>

<mosaic_0001>
module attributes {stable_mosaic.version = 11 : i64} {
  func.func @_linear_kernel(%arg0: i32, %arg1: memref<16x24xf32, #tpu.memory_space<vmem>>, %arg2: memref<24x32xf32, #tpu.memory_space<vmem>>, %arg3: memref<1x32xf32, #tpu.memory_space<vmem>>, %arg4: memref<16x32xf32, #tpu.memory_space<vmem>>) attributes {dimension_semantics = [#tpu.dimension_semantics<parallel>], iteration_bounds = array<i64: 2>, scalar_prefetch = 0 : i64, scratch_operands = 0 : i64, tpu.core_type = #tpu.core_type<tc>, window_params = [{transform_indices = @transform_0, window_bounds = array<i64: 16, 24>}, {pipeline_mode = #tpu.pipeline_mode<synchronous>, transform_indices = @transform_1, window_bounds = array<i64: 24, 32>}, {pipeline_mode = #tpu.pipeline_mode<synchronous>, transform_indices = @transform_2, window_bounds = array<i64: 1, 32>}, {transform_indices = @transform_3, window_bounds = array<i64: 16, 32>}]} {
    %c0 = arith.constant 0 : index
    %c0_0 = arith.constant 0 : index
    %0 = vector.load %arg1[%c0, %c0_0] : memref<16x24xf32, #tpu.memory_space<vmem>>, vector<16x24xf32>
    %c0_1 = arith.constant 0 : index
    %c0_2 = arith.constant 0 : index
    %1 = vector.load %arg2[%c0_1, %c0_2] : memref<24x32xf32, #tpu.memory_space<vmem>>, vector<24x32xf32>
    %cst = arith.constant dense<0.000000e+00> : vector<16x32xf32>
    %2 = tpu.matmul %0, %1, %cst {dimension_numbers = #tpu.dot_dimension_numbers<[1], [0], [0], [1], [0, 0, 1, 1], [], []>} : vector<16x24xf32>, vector<24x32xf32>, vector<16x32xf32> -> vector<16x32xf32>
    %c0_3 = arith.constant 0 : index
    %c0_4 = arith.constant 0 : index
    %3 = vector.load %arg3[%c0_3, %c0_4] : memref<1x32xf32, #tpu.memory_space<vmem>>, vector<1x32xf32>
    %4 = vector.broadcast %3 : vector<1x32xf32> to vector<16x32xf32>
    %5 = arith.addf %2, %4 : vector<16x32xf32>
    %c0_5 = arith.constant 0 : index
    %c0_6 = arith.constant 0 : index
    %6 = vector.load %arg4[%c0_5, %c0_6] : memref<16x32xf32, #tpu.memory_space<vmem>>, vector<16x32xf32>
    tpu.vector_store %arg4[%c0_5, %c0_6], %5 {strides = array<i32>} : memref<16x32xf32, #tpu.memory_space<vmem>>, vector<16x32xf32>,
    return
  }
  func.func @transform_0(%arg0: i32) -> (i32, i32) {
    %c0_i32 = arith.constant 0 : i32
    %c0_i32_0 = arith.constant 0 : i32
    return %arg0, %c0_i32 : i32, i32
  }
  func.func @transform_1(%arg0: i32) -> (i32, i32) {
    %c0_i32 = arith.constant 0 : i32
    %c0_i32_0 = arith.constant 0 : i32
    %c0_i32_1 = arith.constant 0 : i32
    return %c0_i32, %c0_i32_0 : i32, i32
  }
  func.func @transform_2(%arg0: i32) -> (i32, i32) {
    %c0_i32 = arith.constant 0 : i32
    %c0_i32_0 = arith.constant 0 : i32
    %c0_i32_1 = arith.constant 0 : i32
    return %c0_i32, %c0_i32_0 : i32, i32
  }
  func.func @transform_3(%arg0: i32) -> (i32, i32) {
    %c0_i32 = arith.constant 0 : i32
    %c0_i32_0 = arith.constant 0 : i32
    return %arg0, %c0_i32 : i32, i32
  }
}

</mosaic_0001>

<bundles_post_ra>
// kernel: tpu_custom_call.1
= control target key start
LH: loop header
LB: loop body
LE: loop exit
PB: predicated region body
PF: predicated region fallthrough
CT: control target
= control target key end

     0   :  { %8 = vsyncpa [#allocation3], 0  ;;  %s534_s0 = inlined_call_operand.vmem [shape: f32[32,24], index: 0, kind: input, shape index: {}]   ;;  %s535_s1 = inlined_call_operand.vmem [shape: f32[24,32], index: 1, kind: input, shape index: {}]   ;;  %s536_s2 = inlined_call_operand.vmem [shape: f32[1,32], index: 2, kind: input, shape index: {}]   ;;  %s537_s3 = inlined_call_operand.hbm [shape: f32[32,32], index: 3, kind: output, shape index: {}]  }
   0x1   :  { %10 = vsyncpa [#allocation3 + $0x1], 0  ;;  %s438_s12 = smov 0   ;;  %s440_s13 = smov 0  }
   0x2   :  { %s442_s14 = smov 0   ;;  %s444_s15 = smov 0  }
   0x3 LB: > { %s459_s16 = sadd.s32 4294967295, %s414_s15   ;;  %s292_s17 = sadd.s32 4294967294, %s414_s15   ;;  %s414_s15 = sphi %s444_s15, %s543_s15   ;;  %s410_s14 = sphi %s442_s14, %s542_s14   ;;  %s406_s13 = sphi %s440_s13, %s541_s13   ;;  %s402_s12 = sphi %s438_s12, %s540_s12  }
   0x4   : > { %s463_s18 = sadd.s32 1, %s414_s15   ;;  %s91_s19 = sadd.s32 1, %s410_s14 }
   0x5   : > { %s88_s20 = ssub.s32 %s414_s15, %s463_s18  ;;  %p101_p0 = scmp.ne.s32.totalorder %s410_s14, %s406_s13 }
   0x6   : > { %p89_p1 = scmp.eq.s32.totalorder %s88_s20, 0  ;;  %p102_p2 = scmp.eq.s32.totalorder %s459_s16, 1 }
   0x7   : > { %p107_p3 = scmp.ne.s32.totalorder %s406_s13, %s402_s12  ;;  %p108_p4 = scmp.eq.s32.totalorder %s292_s17, 1 }
   0x8   : > { %s474_s21 = scalar_select %p89_p1, %s410_s14, %s91_s19  }
   0x9   : > { %p476_p5 = por %p102_p2, %p101_p0  ;;  %p480_p6 = por %p108_p4, %p107_p3 }
   0xa   : > { %p295_p7 = scmp.ge.s32.totalorder %s414_s15, 1  ;;  %p141_p8 = scmp.lt.s32.totalorder %s414_s15, 3 }
   0xc   : > { %p142_p9 = pnand %p295_p7, %p141_p8 }
   0xd   : > { %s297_s28 = sshll.u32 (!%p142_p9), %s459_s16, 1  ;;  %s162_s8 = sand.u32 (!%p142_p9), 1, %s406_s13  }
   0xe   : > { %145 = sbr.rel (%p142_p9) target bundleno = 158 (0x9e), region = 32  ;;  %p166_p10 = scmp.lt.s32.totalorder (!%p142_p9), %s297_s28, 3 }
   0xf   : > { %s296_s9 = sshll.u32 (!%p142_p9), %s162_s8, 4  ;;  %s306_s10 = sshll.u32 (!%p142_p9), %s459_s16, 4 }
  0x10   : > { %s226_s19 = scalar_lea.hbm (!%p142_p9), %s537_s3, %s306_s10  ;;  %s164_s25 = scalar_lea.vmem (!%p142_p9), [#allocation2], %s296_s9 }
  0x11   : > { %s227_s26 = sshll.u32 (!%p142_p9), %s164_s25, 4  ;;  %s229_s27 = sshll.u32 (!%p142_p9), %s226_s19, 4  ;;  %s228_s26 = int_to_ptr.vmem [resolvable:$true] %s227_s26  ;;  %s230_s27 = int_to_ptr.hbm [resolvable:$true] %s229_s27 }
  0x12   : > { %s215_s16 = scalar_lea.sflag (!%p142_p9), [#allocation3], %s162_s8  ;;  %s372_s5 = scalar_lea.hbm (!%p142_p9), %s537_s3, 32 }
  0x13   : > { %v176_v0 = vld [vmem:[%s535_s1 + $0x10] sm:$0xff]  ;;  %v175_v1 = vld [vmem:[%s535_s1 + $0x8] sm:$0xff]  ;;  %v174_v2 = vld [vmem:[%s535_s1] sm:$0xff]  ;;  %s545_s28 = smov (!%p166_p10, %s297_s28), 3  ;;  %vm181_vm0 = vcmask 195584   ;;  %vm211_vm1 = vcmask 261120  }
  0x14   : > { %201 = vmatpush.msra.mxu0 %v176_v0  ;;  %307 = vmatpush.msra.mxu1 %v176_v0  ;;  %s298_s4 = sshll.u32 %s545_s28, 3  ;;  %v351_v5 = vld [vmem:[%s536_s2] ss:$0 sm:$0xff]  ;;  %s366_s28 = sshra.s32 %s230_s27, 4  ;;  %s367_s28 = int_to_ptr.hbm [resolvable:$true] %s366_s28 }
  0x15   : > { %s169_s7 = scalar_lea.vmem %s534_s0, %s298_s4  ;;  %s368_s29 = scalar_lea.hbm %s367_s28, 16 }
  0x16   : > { %202 = vmatpush.msra.mxu0 %v175_v1  ;;  %308 = vmatpush.msra.mxu1 %v175_v1  ;;  %v172_v3 = vld [vmem:[%s169_s7] sm:$0xff]  ;;  %v173_v4 = vld [vmem:[%s169_s7 + $0x8] sm:$0xff]  ;;  %p369_p11 = scmp.ne.s32.totalorder %s367_s28, %s368_s29  ;;  %p373_p0 = scmp.lt.s32.totalorder %s367_s28, %s537_s3 }
  0x17   : > { %p374_p1 = scmp.lt.s32.totalorder %s372_s5, %s368_s29 }
  0x18   : > { %203 = vmatpush.msra.mxu0 %v174_v2  ;;  %309 = vmatpush.msra.mxu1 %v174_v2  ;;  %p370_p12 = pnand %p369_p11, %p476_p5 }
  0x19   : > { %299 = vmatmul.msk.f32.vlgmr.msra.gmra.mxu0 %vm181_vm0, %v172_v3  ;;  %300 = vmatmul.msk.f32.vlgmr.msra.gmra.mxu1 %vm181_vm0, %v173_v4  ;;  %p375_p2 = por %p374_p1, %p373_p0 }
  0x1a   : > { %p371_p13 = pneg %p370_p12 }
  0x1c   : > { %p376_p3 = pnand %p375_p2, %p371_p13 }
  0x96   : > { %v205_v6 = vpop.f32.mrf.mxu0  ;;  %v208_v7 = vpop.f32.mrf.mxu1 }
  0x97   : > { %v206_v8 = vadd.f32 %v351_v5, %v205_v6  ;;  %v209_v9 = vadd.f32 %v351_v5, %v208_v7 }
  0x99   : > { %212 = vst.msk [vmem:[%s164_s25] sm:$0xff] %vm211_vm1, %v206_v8 }
  0x9a   : > { %213 = vst.msk [vmem:[%s164_s25 + $0x8] sm:$0xff] %vm211_vm1, %v209_v9 }
  0x9b   : > { %379 = shalt.err (!%p376_p3)
}
  0x9c   : > { %s416_s8 = smov 128   ;;  %s417_s9 = smov 8  }
  0x9d   : > { %310 = dma.vmem_to_hbm [thread:$0]  (%p476_p5), %s228_s26, 256, %s230_s27, %s215_s16, %s416_s8, %s416_s8, %s417_s9  }
  0x9e PF: > { %p316_p4 = scmp.ge.s32.totalorder %s414_s15, 2  ;;  %s244_s10 = sand.u32 1, %s402_s12  }
  0x9f   : > { %s245_s11 = scalar_lea.sflag [#allocation3], %s244_s10 }
  0xa0   : > { %p313_p7 = pnand %p316_p4, %p480_p6 }
  0xa2   : > { %p314_p8 = pneg %p313_p7 }
  0xa4   : > { %397 = dma.done.wait (%p314_p8), %s245_s11, 256  }
  0xa5   : > { %399 = vsyncadd (%p314_p8), %s245_s11, 4294967040  ;;  %p13_p9 = scmp.ge.s32.totalorder %s463_s18, 4   ;;  %s540_s12 = smov %s406_s13 }
  0xa6   : > { %s541_s13 = smov %s410_s14  ;;  %s542_s14 = smov %s474_s21 }
  0xa7   : > { %s543_s15 = smov %s463_s18  ;;  %15 = sbr.rel (!%p13_p9) target bundleno = 3 (0x3), region = 67 }
  0xac   :  { %251 = vsyncpa [#allocation3], 1 }
  0xad   :  { %253 = vsyncpa [#allocation3 + $0x1], 1 }

</bundles_post_ra>
